<compile_context>
chip_gen: v7x
topology: tpu7x:2x2x1
jax: 0.10.0
libtpu: 0.0.40
codegen_flags: <defaults>
</compile_context>

<pallas_src>
import functools

import jax
import jax.numpy as jnp
from jax.experimental import pallas as pl
from jax.experimental.pallas import tpu as pltpu

IN_DIM = 28 * 28          # 784 (unpadded: full-dim BlockSpec, Mosaic masks the lane pad)
HID_DIM = 512
OUT_DIM = 10
OUT_PAD = 128             # lane-dense output width; wrapper slices [:, :10]


def _round_up(x: int, m: int) -> int:
    return ((x + m - 1) // m) * m


def mlp_kernel(x_ref, w1_ref, b1_ref, w2_ref, b2_ref, o_ref):
    # bf16 cast only at the MXU boundary (x stays f32 in HBM/VMEM).
    xb = x_ref[...].astype(jnp.bfloat16)
    # fc1: (tile_b, 784)bf16 @ (784, 512)bf16 -> f32 accumulate on the MXU.
    h = jnp.dot(xb, w1_ref[...], preferred_element_type=jnp.float32)
    # bias + ReLU in f32 on the VPU (v5e has no bf16 VPU path).
    h = jnp.maximum(h + b1_ref[...], 0.0)
    # fc2: downcast the hidden activation to bf16 only as MXU input.
    y = jnp.dot(h.astype(jnp.bfloat16), w2_ref[...],
                preferred_element_type=jnp.float32)
    # bf16 writeback (lane-dense 128-wide output block).
    o_ref[...] = (y + b2_ref[...]).astype(o_ref.dtype)


def prepare_params(w1, b1, w2, b2):
    """One-time weight prep, hoisted out of the per-call path.

    w1: (784, 512), b1: (512,), w2: (512, 10), b2: (10,).
    """
    w1_b = w1.astype(jnp.bfloat16)                                  # (784, 512)
    b1_r = b1.reshape(1, HID_DIM).astype(jnp.float32)               # (1, 512)
    w2_p = jnp.zeros((HID_DIM, OUT_PAD), jnp.bfloat16)
    w2_p = w2_p.at[:, :OUT_DIM].set(w2.astype(jnp.bfloat16))        # (512, 128)
    b2_p = jnp.zeros((1, OUT_PAD), jnp.float32)
    b2_p = b2_p.at[0, :OUT_DIM].set(b2.astype(jnp.float32))         # (1, 128)
    return w1_b, b1_r, w2_p, b2_p


def net_forward(x, params, *, block_b=512):
    """Forward pass of Net: relu(x @ w1 + b1) @ w2 + b2 (returns f32 (B, 10))."""
    w1_b, b1_r, w2_p, b2_p = params
    x2d = x.reshape(-1, IN_DIM)
    B = x2d.shape[0]

    # Batch tile: multiple of 16 (bf16 sublane packing), capped at block_b.
    tile_b = min(block_b, _round_up(B, 16))
    # If one tile would cover the whole batch, halve it so the 2 TCs on v7x
    # each get at least one grid step.
    if _round_up(B, tile_b) // tile_b < 2 and tile_b >= 256:
        tile_b = _round_up(tile_b // 2, 16)
    B_pad = _round_up(B, tile_b)
    if B_pad != B:
        x2d = jnp.pad(x2d, ((0, B_pad - B), (0, 0)))

    grid = (B_pad // tile_b,)

    flops = 2 * B_pad * (IN_DIM * HID_DIM + HID_DIM * OUT_PAD)
    bytes_accessed = (
        B_pad * IN_DIM * x2d.dtype.itemsize          # x read
        + w1_b.size * 2 + w2_p.size * 2              # bf16 weights
        + b1_r.size * 4 + b2_p.size * 4              # f32 biases
        + B_pad * OUT_PAD * 2                        # bf16 output write
    )

    out = pl.pallas_call(
        mlp_kernel,
        out_shape=jax.ShapeDtypeStruct((B_pad, OUT_PAD), jnp.bfloat16),
        grid=grid,
        in_specs=[
            pl.BlockSpec((tile_b, IN_DIM), lambda i: (i, 0)),     # x tile (pipelined)
            pl.BlockSpec((IN_DIM, HID_DIM), lambda i: (0, 0)),    # w1 resident
            pl.BlockSpec((1, HID_DIM), lambda i: (0, 0)),         # b1 resident
            pl.BlockSpec((HID_DIM, OUT_PAD), lambda i: (0, 0)),   # w2 resident
            pl.BlockSpec((1, OUT_PAD), lambda i: (0, 0)),         # b2 resident
        ],
        out_specs=pl.BlockSpec((tile_b, OUT_PAD), lambda i: (i, 0)),
        compiler_params=pltpu.CompilerParams(
            dimension_semantics=("parallel",),
            vmem_limit_bytes=32 << 20,
        ),
        cost_estimate=pl.CostEstimate(
            flops=flops, transcendentals=0, bytes_accessed=bytes_accessed),
    )(x2d, w1_b, b1_r, w2_p, b2_p)

    # Padded batch rows / padded output lanes are sliced away here.
    return out[:B, :OUT_DIM].astype(jnp.float32)


if __name__ == "__main__":
    key = jax.random.PRNGKey(0)
    kx, kw1, kb1, kw2, kb2 = jax.random.split(key, 5)

    # Small batch of MNIST-shaped inputs (B, 1, 28, 28) -> flattened in wrapper.
    B = 8
    x = jax.random.normal(kx, (B, 1, 28, 28), dtype=jnp.float32)

    # Deterministic parameter init (scaled like torch's default uniform fan-in).
    w1 = jax.random.uniform(kw1, (IN_DIM, HID_DIM), jnp.float32,
                            -1.0 / (IN_DIM ** 0.5), 1.0 / (IN_DIM ** 0.5))
    b1 = jax.random.uniform(kb1, (HID_DIM,), jnp.float32,
                            -1.0 / (IN_DIM ** 0.5), 1.0 / (IN_DIM ** 0.5))
    w2 = jax.random.uniform(kw2, (HID_DIM, OUT_DIM), jnp.float32,
                            -1.0 / (HID_DIM ** 0.5), 1.0 / (HID_DIM ** 0.5))
    b2 = jax.random.uniform(kb2, (OUT_DIM,), jnp.float32,
                            -1.0 / (HID_DIM ** 0.5), 1.0 / (HID_DIM ** 0.5))

    # One-time weight prep (hoisted out of the forward path), then jit forward.
    params = prepare_params(w1, b1, w2, b2)
    fwd = jax.jit(functools.partial(net_forward, params=params))

    out = fwd(x)
    jax.block_until_ready(out)
    assert out.shape == (B, OUT_DIM)

    # Reference matched to the kernel's bf16-input / f32-accumulate / bf16-store
    # precision choice.
    x2d = x.reshape(-1, IN_DIM)
    xb = x2d.astype(jnp.bfloat16).astype(jnp.float32)
    w1b = w1.astype(jnp.bfloat16).astype(jnp.float32)
    w2b = w2.astype(jnp.bfloat16).astype(jnp.float32)
    h_ref = jnp.maximum(xb @ w1b + b1, 0.0)
    h_ref = h_ref.astype(jnp.bfloat16).astype(jnp.float32)
    ref = (h_ref @ w2b + b2).astype(jnp.bfloat16).astype(jnp.float32)
    assert jnp.allclose(out, ref, atol=2e-2, rtol=2e-2)

    # Loose sanity check against the full-f32 reference as well.
    ref_f32 = jnp.maximum(x2d @ w1 + b1, 0.0) @ w2 + b2
    assert jnp.allclose(out, ref_f32, atol=6e-2, rtol=6e-2)

    print("KERNEL_OK")
</pallas_src>

<mosaic_0001>
module attributes {stable_mosaic.version = 11 : i64} {
  func.func @mlp_kernel(%arg0: i32, %arg1: memref<16x784xf32, #tpu.memory_space<vmem>>, %arg2: memref<784x512xbf16, #tpu.memory_space<vmem>>, %arg3: memref<1x512xf32, #tpu.memory_space<vmem>>, %arg4: memref<512x128xbf16, #tpu.memory_space<vmem>>, %arg5: memref<1x128xf32, #tpu.memory_space<vmem>>, %arg6: memref<16x128xbf16, #tpu.memory_space<vmem>>) attributes {dimension_semantics = [#tpu.dimension_semantics<parallel>], iteration_bounds = array<i64: 1>, scalar_prefetch = 0 : i64, scratch_operands = 0 : i64, tpu.core_type = #tpu.core_type<tc>, window_params = [{transform_indices = @transform_0, window_bounds = array<i64: 16, 784>}, {pipeline_mode = #tpu.pipeline_mode<synchronous>, transform_indices = @transform_1, window_bounds = array<i64: 784, 512>}, {pipeline_mode = #tpu.pipeline_mode<synchronous>, transform_indices = @transform_2, window_bounds = array<i64: 1, 512>}, {pipeline_mode = #tpu.pipeline_mode<synchronous>, transform_indices = @transform_3, window_bounds = array<i64: 512, 128>}, {pipeline_mode = #tpu.pipeline_mode<synchronous>, transform_indices = @transform_4, window_bounds = array<i64: 1, 128>}, {transform_indices = @transform_5, window_bounds = array<i64: 16, 128>}]} {
    %c0 = arith.constant 0 : index
    %c0_0 = arith.constant 0 : index
    %0 = vector.load %arg1[%c0, %c0_0] : memref<16x784xf32, #tpu.memory_space<vmem>>, vector<16x784xf32>
    %1 = arith.truncf %0 : vector<16x784xf32> to vector<16x784xbf16>
    %c0_1 = arith.constant 0 : index
    %c0_2 = arith.constant 0 : index
    %2 = vector.load %arg2[%c0_1, %c0_2] : memref<784x512xbf16, #tpu.memory_space<vmem>>, vector<784x512xbf16>
    %cst = arith.constant dense<0.000000e+00> : vector<16x512xf32>
    %3 = tpu.matmul %1, %2, %cst {dimension_numbers = #tpu.dot_dimension_numbers<[1], [0], [0], [1], [0, 0, 1, 1], [], []>} : vector<16x784xbf16>, vector<784x512xbf16>, vector<16x512xf32> -> vector<16x512xf32>
    %c0_3 = arith.constant 0 : index
    %c0_4 = arith.constant 0 : index
    %4 = vector.load %arg3[%c0_3, %c0_4] : memref<1x512xf32, #tpu.memory_space<vmem>>, vector<1x512xf32>
    %5 = vector.broadcast %4 : vector<1x512xf32> to vector<16x512xf32>
    %6 = arith.addf %3, %5 : vector<16x512xf32>
    %cst_5 = arith.constant 0.000000e+00 : f32
    %7 = vector.broadcast %cst_5 : f32 to vector<16x512xf32>
    %8 = arith.maximumf %6, %7 : vector<16x512xf32>
    %9 = arith.truncf %8 : vector<16x512xf32> to vector<16x512xbf16>
    %c0_6 = arith.constant 0 : index
    %c0_7 = arith.constant 0 : index
    %10 = vector.load %arg4[%c0_6, %c0_7] : memref<512x128xbf16, #tpu.memory_space<vmem>>, vector<512x128xbf16>
    %cst_8 = arith.constant dense<0.000000e+00> : vector<16x128xf32>
    %11 = tpu.matmul %9, %10, %cst_8 {dimension_numbers = #tpu.dot_dimension_numbers<[1], [0], [0], [1], [0, 0, 1, 1], [], []>} : vector<16x512xbf16>, vector<512x128xbf16>, vector<16x128xf32> -> vector<16x128xf32>
    %c0_9 = arith.constant 0 : index
    %c0_10 = arith.constant 0 : index
    %12 = vector.load %arg5[%c0_9, %c0_10] : memref<1x128xf32, #tpu.memory_space<vmem>>, vector<1x128xf32>
    %13 = vector.broadcast %12 : vector<1x128xf32> to vector<16x128xf32>
    %14 = arith.addf %11, %13 : vector<16x128xf32>
    %15 = arith.truncf %14 : vector<16x128xf32> to vector<16x128xbf16>
    %c0_11 = arith.constant 0 : index
    %c0_12 = arith.constant 0 : index
    %16 = vector.load %arg6[%c0_11, %c0_12] : memref<16x128xbf16, #tpu.memory_space<vmem>>, vector<16x128xbf16>
    tpu.vector_store %arg6[%c0_11, %c0_12], %15 {strides = array<i32>} : memref<16x128xbf16, #tpu.memory_space<vmem>>, vector<16x128xbf16>,
    return
  }
  func.func @transform_0(%arg0: i32) -> (i32, i32) {
    %c0_i32 = arith.constant 0 : i32
    %c0_i32_0 = arith.constant 0 : i32
    return %arg0, %c0_i32 : i32, i32
  }
  func.func @transform_1(%arg0: i32) -> (i32, i32) {
    %c0_i32 = arith.constant 0 : i32
    %c0_i32_0 = arith.constant 0 : i32
    %c0_i32_1 = arith.constant 0 : i32
    return %c0_i32, %c0_i32_0 : i32, i32
  }
  func.func @transform_2(%arg0: i32) -> (i32, i32) {
    %c0_i32 = arith.constant 0 : i32
    %c0_i32_0 = arith.constant 0 : i32
    %c0_i32_1 = arith.constant 0 : i32
    return %c0_i32, %c0_i32_0 : i32, i32
  }
  func.func @transform_3(%arg0: i32) -> (i32, i32) {
    %c0_i32 = arith.constant 0 : i32
    %c0_i32_0 = arith.constant 0 : i32
    %c0_i32_1 = arith.constant 0 : i32
    return %c0_i32, %c0_i32_0 : i32, i32
  }
  func.func @transform_4(%arg0: i32) -> (i32, i32) {
    %c0_i32 = arith.constant 0 : i32
    %c0_i32_0 = arith.constant 0 : i32
    %c0_i32_1 = arith.constant 0 : i32
    return %c0_i32, %c0_i32_0 : i32, i32
  }
  func.func @transform_5(%arg0: i32) -> (i32, i32) {
    %c0_i32 = arith.constant 0 : i32
    %c0_i32_0 = arith.constant 0 : i32
    return %arg0, %c0_i32 : i32, i32
  }
}

</mosaic_0001>

<bundles_post_ra>
// kernel: net_forward.1
= control target key start
LH: loop header
LB: loop body
LE: loop exit
PB: predicated region body
PF: predicated region fallthrough
CT: control target
= control target key end

     0   :  { %vm1240_vm0 = vcmask 130048   ;;  %s3368_s1 = inlined_call_operand.vmem [shape: bf16[784,512], index: 1, kind: input, shape index: {}]   ;;  %s3369_s0 = inlined_call_operand.vmem [shape: f32[16,784], index: 0, kind: input, shape index: {}]   ;;  %s3370_s3 = inlined_call_operand.vmem [shape: bf16[512,128], index: 3, kind: input, shape index: {}]   ;;  %s3371_s2 = inlined_call_operand.vmem [shape: f32[1,512], index: 2, kind: input, shape index: {}]   ;;  %s3372_s4 = inlined_call_operand.vmem [shape: f32[1,128], index: 4, kind: input, shape index: {}]   ;;  %s3373_s5 = inlined_call_operand.vmem [shape: bf16[16,128], index: 5, kind: output, shape index: {}]  }
   0x1   :  { %v2276_v0 = vld [vmem:[%s3368_s1 + $0x4] ss:$16 sps:$4 sm:$0xff]   ;;  %v2278_v1 = vld [vmem:[%s3368_s1 + $0xc] ss:$16 sps:$4 sm:$0xff]   ;;  %v2280_v2 = vld [vmem:[%s3368_s1] ss:$16 sps:$4 sm:$0xff]  }
   0x2   :  { %1244 = vmatprep.subr.bf16.mxu0 %v2276_v0  ;;  %v2281_v3 = vld [vmem:[%s3368_s1 + $0x8] ss:$16 sps:$4 sm:$0xff]   ;;  %1416 = vmatprep.subr.bf16.mxu1 %v2278_v1  ;;  %v2282_v4 = vld [vmem:[%s3368_s1 + $0x24] ss:$16 sps:$4 sm:$0xff]   ;;  %v2284_v5 = vld [vmem:[%s3368_s1 + $0x2c] ss:$16 sps:$4 sm:$0xff]  }
   0x3   :  { %1245 = vmatpush1.bf16.msra.mxu0 %v2280_v2  ;;  %1417 = vmatpush1.bf16.msra.mxu1 %v2281_v3  ;;  %v2286_v6 = vld [vmem:[%s3368_s1 + $0x20] ss:$16 sps:$4 sm:$0xff]   ;;  %v2287_v7 = vld [vmem:[%s3368_s1 + $0x28] ss:$16 sps:$4 sm:$0xff]   ;;  %v2288_v8 = vld [vmem:[%s3368_s1 + $0x44] ss:$16 sps:$4 sm:$0xff]  }
   0x4   :  { %1246 = vmatprep.subr.bf16.mxu0 %v2282_v4  ;;  %1418 = vmatprep.subr.bf16.mxu1 %v2284_v5  ;;  %v2290_v9 = vld [vmem:[%s3368_s1 + $0x4c] ss:$16 sps:$4 sm:$0xff]   ;;  %v2292_v10 = vld [vmem:[%s3368_s1 + $0x40] ss:$16 sps:$4 sm:$0xff]   ;;  %v2293_v11 = vld [vmem:[%s3368_s1 + $0x48] ss:$16 sps:$4 sm:$0xff]  }
   0x5   :  { %v2294_v12 = vld [vmem:[%s3368_s1 + $0x64] ss:$16 sps:$4 sm:$0xff]   ;;  %v2296_v13 = vld [vmem:[%s3368_s1 + $0x6c] ss:$16 sps:$4 sm:$0xff]   ;;  %v2298_v14 = vld [vmem:[%s3368_s1 + $0x60] ss:$16 sps:$4 sm:$0xff]  }
   0x6   :  { %v2299_v15 = vld [vmem:[%s3368_s1 + $0x68] ss:$16 sps:$4 sm:$0xff]   ;;  %v2300_v16 = vld [vmem:[%s3368_s1 + $0x84] ss:$16 sps:$4 sm:$0xff]   ;;  %v2302_v17 = vld [vmem:[%s3368_s1 + $0x8c] ss:$16 sps:$4 sm:$0xff]  }
   0x7   :  { %1247 = vmatpush1.bf16.msra.mxu0 %v2286_v6  ;;  %1419 = vmatpush1.bf16.msra.mxu1 %v2287_v7  ;;  %v2304_v18 = vld [vmem:[%s3368_s1 + $0x80] ss:$16 sps:$4 sm:$0xff]   ;;  %v2305_v19 = vld [vmem:[%s3368_s1 + $0x88] ss:$16 sps:$4 sm:$0xff]   ;;  %v2306_v20 = vld [vmem:[%s3368_s1 + $0xa4] ss:$16 sps:$4 sm:$0xff]  }
   0x8   :  { %1248 = vmatprep.subr.bf16.mxu0 %v2288_v8  ;;  %1420 = vmatprep.subr.bf16.mxu1 %v2290_v9  ;;  %v2308_v21 = vld [vmem:[%s3368_s1 + $0xac] ss:$16 sps:$4 sm:$0xff]   ;;  %v2310_v22 = vld [vmem:[%s3368_s1 + $0xa0] ss:$16 sps:$4 sm:$0xff]   ;;  %v2311_v23 = vld [vmem:[%s3368_s1 + $0xa8] ss:$16 sps:$4 sm:$0xff]  }
   0x9   :  { %v2312_v24 = vld [vmem:[%s3368_s1 + $0xc4] ss:$16 sps:$4 sm:$0xff]   ;;  %v2314_v25 = vld [vmem:[%s3368_s1 + $0xcc] ss:$16 sps:$4 sm:$0xff]   ;;  %v2316_v26 = vld [vmem:[%s3368_s1 + $0xc0] ss:$16 sps:$4 sm:$0xff]  }
   0xa   :  { %v2317_v27 = vld [vmem:[%s3368_s1 + $0xc8] ss:$16 sps:$4 sm:$0xff]   ;;  %v2318_v28 = vld [vmem:[%s3368_s1 + $0xe4] ss:$16 sps:$4 sm:$0xff]   ;;  %v2320_v29 = vld [vmem:[%s3368_s1 + $0xec] ss:$16 sps:$4 sm:$0xff]  }
   0xb   :  { %1249 = vmatpush1.bf16.msra.mxu0 %v2292_v10  ;;  %1421 = vmatpush1.bf16.msra.mxu1 %v2293_v11  ;;  %v2322_v30 = vld [vmem:[%s3368_s1 + $0xe0] ss:$16 sps:$4 sm:$0xff]   ;;  %v2323_v31 = vld [vmem:[%s3368_s1 + $0xe8] ss:$16 sps:$4 sm:$0xff]   ;;  %v2324_v32 = vld [vmem:[%s3368_s1 + $0x104] ss:$16 sps:$4 sm:$0xff]  }
   0xc   :  { %1250 = vmatprep.subr.bf16.mxu0 %v2294_v12  ;;  %1422 = vmatprep.subr.bf16.mxu1 %v2296_v13  ;;  %v2326_v33 = vld [vmem:[%s3368_s1 + $0x10c] ss:$16 sps:$4 sm:$0xff]   ;;  %v2328_v34 = vld [vmem:[%s3368_s1 + $0x100] ss:$16 sps:$4 sm:$0xff]   ;;  %v2329_v35 = vld [vmem:[%s3368_s1 + $0x108] ss:$16 sps:$4 sm:$0xff]  }
   0xd   :  { %v2330_v36 = vld [vmem:[%s3368_s1 + $0x124] ss:$16 sps:$4 sm:$0xff]   ;;  %v2332_v37 = vld [vmem:[%s3368_s1 + $0x12c] ss:$16 sps:$4 sm:$0xff]   ;;  %v2334_v38 = vld [vmem:[%s3368_s1 + $0x120] ss:$16 sps:$4 sm:$0xff]  }
   0xe   :  { %v2335_v39 = vld [vmem:[%s3368_s1 + $0x128] ss:$16 sps:$4 sm:$0xff]   ;;  %v2336_v40 = vld [vmem:[%s3368_s1 + $0x144] ss:$16 sps:$4 sm:$0xff]   ;;  %v2338_v41 = vld [vmem:[%s3368_s1 + $0x14c] ss:$16 sps:$4 sm:$0xff]  }
   0xf   :  { %1251 = vmatpush1.bf16.msra.mxu0 %v2298_v14  ;;  %1423 = vmatpush1.bf16.msra.mxu1 %v2299_v15  ;;  %v2340_v42 = vld [vmem:[%s3368_s1 + $0x140] ss:$16 sps:$4 sm:$0xff]   ;;  %v2341_v43 = vld [vmem:[%s3368_s1 + $0x148] ss:$16 sps:$4 sm:$0xff]   ;;  %v2342_v44 = vld [vmem:[%s3368_s1 + $0x164] ss:$16 sps:$4 sm:$0xff]  }
  0x10   :  { %1252 = vmatprep.subr.bf16.mxu0 %v2300_v16  ;;  %1424 = vmatprep.subr.bf16.mxu1 %v2302_v17  ;;  %v2344_v45 = vld [vmem:[%s3368_s1 + $0x16c] ss:$16 sps:$4 sm:$0xff]   ;;  %v29_v47 = vld [vmem:[%s3369_s0 + $0x40] sm:$0xff]  ;;  %v2347_v49 = vld [vmem:[%s3368_s1 + $0x168] ss:$16 sps:$4 sm:$0xff]  }
  0x11   :  { %v22_v46 = vld [vmem:[%s3369_s0 + $0x8] sm:$0xff]  ;;  %v2346_v48 = vld [vmem:[%s3368_s1 + $0x160] ss:$16 sps:$4 sm:$0xff]   ;;  %v2348_v51 = vld [vmem:[%s3368_s1 + $0x184] ss:$16 sps:$4 sm:$0xff]  }
  0x12   :  { %v36_v50 = vpack.c.bf16 %v29_v47, %v22_v46  ;;  %v2350_v52 = vld [vmem:[%s3368_s1 + $0x18c] ss:$16 sps:$4 sm:$0xff]   ;;  %v2352_v53 = vld [vmem:[%s3368_s1 + $0x180] ss:$16 sps:$4 sm:$0xff]   ;;  %v2353_v54 = vld [vmem:[%s3368_s1 + $0x188] ss:$16 sps:$4 sm:$0xff]  }
  0x13   :  { %1253 = vmatpush1.bf16.msra.mxu0 %v2304_v18  ;;  %1425 = vmatpush1.bf16.msra.mxu1 %v2305_v19  ;;  %v2354_v55 = vld [vmem:[%s3368_s1 + $0x1a4] ss:$16 sps:$4 sm:$0xff]   ;;  %v2356_v56 = vld [vmem:[%s3368_s1 + $0x1ac] ss:$16 sps:$4 sm:$0xff]   ;;  %v2358_v57 = vld [vmem:[%s3368_s1 + $0x1a0] ss:$16 sps:$4 sm:$0xff]  }
  0x14   :  { %1254 = vmatprep.subr.bf16.mxu0 %v2306_v20  ;;  %1426 = vmatprep.subr.bf16.mxu1 %v2308_v21  ;;  %v2359_v58 = vld [vmem:[%s3368_s1 + $0x1a8] ss:$16 sps:$4 sm:$0xff]   ;;  %v2360_v59 = vld [vmem:[%s3368_s1 + $0x1c4] ss:$16 sps:$4 sm:$0xff]   ;;  %v2362_v60 = vld [vmem:[%s3368_s1 + $0x1cc] ss:$16 sps:$4 sm:$0xff]  }
  0x15   :  { %1276 = vmatprep.mubr.bf16.mxu0 %v36_v50  ;;  %1448 = vmatprep.mubr.bf16.mxu1 %v36_v50  ;;  %v2364_v61 = vld [vmem:[%s3368_s1 + $0x1c0] ss:$16 sps:$4 sm:$0xff]   ;;  %v2365_v62 = vld [vmem:[%s3368_s1 + $0x1c8] ss:$16 sps:$4 sm:$0xff]   ;;  %v2366_v63 = vld [vmem:[%s3368_s1 + $0x1e4] ss:$16 sps:$4 sm:$0xff]  }
  0x16   :  { %v2368_v0 = vld [vmem:[%s3368_s1 + $0x1ec] ss:$16 sps:$4 sm:$0xff]   ;;  %v2370_v1 = vld [vmem:[%s3368_s1 + $0x1e0] ss:$16 sps:$4 sm:$0xff]   ;;  %v2371_v2 = vld [vmem:[%s3368_s1 + $0x1e8] ss:$16 sps:$4 sm:$0xff]  }
  0x17   :  { %1255 = vmatpush1.bf16.msra.mxu0 %v2310_v22  ;;  %1427 = vmatpush1.bf16.msra.mxu1 %v2311_v23  ;;  %v2374_v3 = vld [vmem:[%s3368_s1 + $0x204] ss:$16 sps:$4 sm:$0xff]   ;;  %v28_v5 = vld [vmem:[%s3369_s0 + $0x38] sm:$0xff]  ;;  %v2372_v7 = vld [vmem:[%s3368_s1 + $0x200] ss:$16 sps:$4 sm:$0xff]  }
  0x18   :  { %1256 = vmatprep.subr.bf16.mxu0 %v2312_v24  ;;  %1428 = vmatprep.subr.bf16.mxu1 %v2314_v25  ;;  %v21_v4 = vld [vmem:[%s3369_s0] sm:$0xff]  ;;  %v2377_v6 = vld [vmem:[%s3368_s1 + $0x20c] ss:$16 sps:$4 sm:$0xff]   ;;  %v2375_v8 = vld [vmem:[%s3368_s1 + $0x208] ss:$16 sps:$4 sm:$0xff]  }
  0x19   :  { %v35_v9 = vpack.c.bf16 %v28_v5, %v21_v4  ;;  %v2380_v10 = vld [vmem:[%s3368_s1 + $0x224] ss:$16 sps:$4 sm:$0xff]   ;;  %v2383_v11 = vld [vmem:[%s3368_s1 + $0x22c] ss:$16 sps:$4 sm:$0xff]   ;;  %v2378_v12 = vld [vmem:[%s3368_s1 + $0x220] ss:$16 sps:$4 sm:$0xff]  }
  0x1a   :  { %v2381_v13 = vld [vmem:[%s3368_s1 + $0x228] ss:$16 sps:$4 sm:$0xff]   ;;  %v2386_v14 = vld [vmem:[%s3368_s1 + $0x244] ss:$16 sps:$4 sm:$0xff]   ;;  %v2389_v15 = vld [vmem:[%s3368_s1 + $0x24c] ss:$16 sps:$4 sm:$0xff]  }
  0x1b   :  { %1257 = vmatpush1.bf16.msra.mxu0 %v2316_v26  ;;  %1429 = vmatpush1.bf16.msra.mxu1 %v2317_v27  ;;  %v2384_v16 = vld [vmem:[%s3368_s1 + $0x240] ss:$16 sps:$4 sm:$0xff]   ;;  %v2387_v17 = vld [vmem:[%s3368_s1 + $0x248] ss:$16 sps:$4 sm:$0xff]   ;;  %v2392_v18 = vld [vmem:[%s3368_s1 + $0x264] ss:$16 sps:$4 sm:$0xff]  }
  0x1c   :  { %1258 = vmatprep.subr.bf16.mxu0 %v2318_v28  ;;  %1430 = vmatprep.subr.bf16.mxu1 %v2320_v29  ;;  %v2395_v19 = vld [vmem:[%s3368_s1 + $0x26c] ss:$16 sps:$4 sm:$0xff]   ;;  %v2390_v20 = vld [vmem:[%s3368_s1 + $0x260] ss:$16 sps:$4 sm:$0xff]   ;;  %v2393_v21 = vld [vmem:[%s3368_s1 + $0x268] ss:$16 sps:$4 sm:$0xff]  }
  0x1d   :  { %v2398_v22 = vld [vmem:[%s3368_s1 + $0x284] ss:$16 sps:$4 sm:$0xff]   ;;  %v2401_v23 = vld [vmem:[%s3368_s1 + $0x28c] ss:$16 sps:$4 sm:$0xff]   ;;  %v2396_v24 = vld [vmem:[%s3368_s1 + $0x280] ss:$16 sps:$4 sm:$0xff]  }
  0x1e   :  { %v2399_v25 = vld [vmem:[%s3368_s1 + $0x288] ss:$16 sps:$4 sm:$0xff]   ;;  %v2404_v26 = vld [vmem:[%s3368_s1 + $0x2a4] ss:$16 sps:$4 sm:$0xff]   ;;  %v2407_v27 = vld [vmem:[%s3368_s1 + $0x2ac] ss:$16 sps:$4 sm:$0xff]  }
  0x1f   :  { %1259 = vmatpush1.bf16.msra.mxu0 %v2322_v30  ;;  %1431 = vmatpush1.bf16.msra.mxu1 %v2323_v31  ;;  %v2402_v28 = vld [vmem:[%s3368_s1 + $0x2a0] ss:$16 sps:$4 sm:$0xff]   ;;  %v2405_v29 = vld [vmem:[%s3368_s1 + $0x2a8] ss:$16 sps:$4 sm:$0xff]   ;;  %v2410_v30 = vld [vmem:[%s3368_s1 + $0x2c4] ss:$16 sps:$4 sm:$0xff]  }
  0x20   :  { %1260 = vmatprep.subr.bf16.mxu0 %v2324_v32  ;;  %1432 = vmatprep.subr.bf16.mxu1 %v2326_v33  ;;  %v2413_v31 = vld [vmem:[%s3368_s1 + $0x2cc] ss:$16 sps:$4 sm:$0xff]   ;;  %v31_v33 = vld [vmem:[%s3369_s0 + $0x50] sm:$0xff]  ;;  %v2459_v4 = vld [vmem:[%s3368_s1 + $0x3c8] ss:$16 sps:$4 sm:$0xff]  }
  0x21   :  { %v24_v32 = vld [vmem:[%s3369_s0 + $0x18] sm:$0xff]  ;;  %v2426_v47 = vld [vmem:[%s3368_s1 + $0x320] ss:$16 sps:$4 sm:$0xff]   ;;  %v2464_v5 = vld [vmem:[%s3368_s1 + $0x3e4] ss:$16 sps:$4 sm:$0xff]  }
  0x22   :  { %v2431_v46 = vld [vmem:[%s3368_s1 + $0x32c] ss:$16 sps:$4 sm:$0xff]  }
  0x23   :  { %1261 = vmatpush1.bf16.msra.mxu0 %v2328_v34  ;;  %1433 = vmatpush1.bf16.msra.mxu1 %v2329_v35  ;;  %v2408_v34 = vld [vmem:[%s3368_s1 + $0x2c0] ss:$16 sps:$4 sm:$0xff]   ;;  %v2411_v35 = vld [vmem:[%s3368_s1 + $0x2c8] ss:$16 sps:$4 sm:$0xff]   ;;  %v2437_v50 = vld [vmem:[%s3368_s1 + $0x34c] ss:$16 sps:$4 sm:$0xff]  }
  0x24   :  { %1262 = vmatprep.subr.bf16.mxu0 %v2330_v36  ;;  %1434 = vmatprep.subr.bf16.mxu1 %v2332_v37  ;;  %v38_v36 = vpack.c.bf16 %v31_v33, %v24_v32  ;;  %v2416_v37 = vld [vmem:[%s3368_s1 + $0x2e4] ss:$16 sps:$4 sm:$0xff]   ;;  %v2497_v32 = vld [vmem:[%s3368_s1 + $0x48c] ss:$16 sps:$4 sm:$0xff]   ;;  %v2492_v33 = vld [vmem:[%s3368_s1 + $0x480] ss:$16 sps:$4 sm:$0xff]  }
  0x27   :  { %1263 = vmatpush1.bf16.msra.mxu0 %v2334_v38  ;;  %1435 = vmatpush1.bf16.msra.mxu1 %v2335_v39  ;;  %v2419_v38 = vld [vmem:[%s3368_s1 + $0x2ec] ss:$16 sps:$4 sm:$0xff]   ;;  %v2414_v39 = vld [vmem:[%s3368_s1 + $0x2e0] ss:$16 sps:$4 sm:$0xff]  }
  0x28   :  { %1264 = vmatprep.subr.bf16.mxu0 %v2336_v40  ;;  %1436 = vmatprep.subr.bf16.mxu1 %v2338_v41  ;;  %v2417_v40 = vld [vmem:[%s3368_s1 + $0x2e8] ss:$16 sps:$4 sm:$0xff]   ;;  %v2422_v41 = vld [vmem:[%s3368_s1 + $0x304] ss:$16 sps:$4 sm:$0xff]  }
  0x2b   :  { %1265 = vmatpush1.bf16.msra.mxu0 %v2340_v42  ;;  %1437 = vmatpush1.bf16.msra.mxu1 %v2341_v43  ;;  %v2425_v42 = vld [vmem:[%s3368_s1 + $0x30c] ss:$16 sps:$4 sm:$0xff]   ;;  %v2420_v43 = vld [vmem:[%s3368_s1 + $0x300] ss:$16 sps:$4 sm:$0xff]  }
  0x2c   :  { %1266 = vmatprep.subr.bf16.mxu0 %v2342_v44  ;;  %1438 = vmatprep.subr.bf16.mxu1 %v2344_v45  ;;  %v2423_v44 = vld [vmem:[%s3368_s1 + $0x308] ss:$16 sps:$4 sm:$0xff]   ;;  %v2428_v45 = vld [vmem:[%s3368_s1 + $0x324] ss:$16 sps:$4 sm:$0xff]  }
  0x2f   :  { %1267 = vmatpush1.bf16.msra.mxu0 %v2346_v48  ;;  %1439 = vmatpush1.bf16.msra.mxu1 %v2347_v49  ;;  %v2429_v48 = vld [vmem:[%s3368_s1 + $0x328] ss:$16 sps:$4 sm:$0xff]   ;;  %v2434_v49 = vld [vmem:[%s3368_s1 + $0x344] ss:$16 sps:$4 sm:$0xff]  }
  0x30   :  { %1268 = vmatprep.subr.bf16.mxu0 %v2348_v51  ;;  %1440 = vmatprep.subr.bf16.mxu1 %v2350_v52  ;;  %v2432_v51 = vld [vmem:[%s3368_s1 + $0x340] ss:$16 sps:$4 sm:$0xff]   ;;  %v2435_v52 = vld [vmem:[%s3368_s1 + $0x348] ss:$16 sps:$4 sm:$0xff]  }
  0x33   :  { %1269 = vmatpush1.bf16.msra.mxu0 %v2352_v53  ;;  %1441 = vmatpush1.bf16.msra.mxu1 %v2353_v54  ;;  %v2440_v53 = vld [vmem:[%s3368_s1 + $0x364] ss:$16 sps:$4 sm:$0xff]   ;;  %v2443_v54 = vld [vmem:[%s3368_s1 + $0x36c] ss:$16 sps:$4 sm:$0xff]  }
  0x34   :  { %1270 = vmatprep.subr.bf16.mxu0 %v2354_v55  ;;  %1442 = vmatprep.subr.bf16.mxu1 %v2356_v56  ;;  %v2438_v55 = vld [vmem:[%s3368_s1 + $0x360] ss:$16 sps:$4 sm:$0xff]   ;;  %v2441_v56 = vld [vmem:[%s3368_s1 + $0x368] ss:$16 sps:$4 sm:$0xff]  }
  0x37   :  { %1271 = vmatpush1.bf16.msra.mxu0 %v2358_v57  ;;  %1443 = vmatpush1.bf16.msra.mxu1 %v2359_v58  ;;  %v2446_v57 = vld [vmem:[%s3368_s1 + $0x384] ss:$16 sps:$4 sm:$0xff]   ;;  %v2449_v58 = vld [vmem:[%s3368_s1 + $0x38c] ss:$16 sps:$4 sm:$0xff]  }
  0x38   :  { %1272 = vmatprep.subr.bf16.mxu0 %v2360_v59  ;;  %1444 = vmatprep.subr.bf16.mxu1 %v2362_v60  ;;  %v2444_v59 = vld [vmem:[%s3368_s1 + $0x380] ss:$16 sps:$4 sm:$0xff]   ;;  %v2447_v60 = vld [vmem:[%s3368_s1 + $0x388] ss:$16 sps:$4 sm:$0xff]  }
  0x3b   :  { %1273 = vmatpush1.bf16.msra.mxu0 %v2364_v61  ;;  %1445 = vmatpush1.bf16.msra.mxu1 %v2365_v62  ;;  %v2452_v61 = vld [vmem:[%s3368_s1 + $0x3a4] ss:$16 sps:$4 sm:$0xff]   ;;  %v2455_v62 = vld [vmem:[%s3368_s1 + $0x3ac] ss:$16 sps:$4 sm:$0xff]  }
  0x3c   :  { %1274 = vmatprep.subr.bf16.mxu0 %v2366_v63  ;;  %1446 = vmatprep.subr.bf16.mxu1 %v2368_v0  ;;  %v2450_v63 = vld [vmem:[%s3368_s1 + $0x3a0] ss:$16 sps:$4 sm:$0xff]   ;;  %v2453_v0 = vld [vmem:[%s3368_s1 + $0x3a8] ss:$16 sps:$4 sm:$0xff]  }
  0x3f   :  { %1275 = vmatpush1.bf16.msra.mxu0 %v2370_v1  ;;  %1447 = vmatpush1.bf16.msra.mxu1 %v2371_v2  ;;  %v2458_v1 = vld [vmem:[%s3368_s1 + $0x3c4] ss:$16 sps:$4 sm:$0xff]   ;;  %v2461_v2 = vld [vmem:[%s3368_s1 + $0x3cc] ss:$16 sps:$4 sm:$0xff]  }
  0x40   :  { %1287 = vmatprep.subr.bf16.mxu0 %v2374_v3  ;;  %1459 = vmatprep.subr.bf16.mxu1 %v2377_v6  ;;  %v2456_v3 = vld [vmem:[%s3368_s1 + $0x3c0] ss:$16 sps:$4 sm:$0xff]   ;;  %v2467_v6 = vld [vmem:[%s3368_s1 + $0x3ec] ss:$16 sps:$4 sm:$0xff]  }
  0x42   :  { %1277 = vmatmul.mubr.bf16.vlgmr.msra.gmra.mrb[0].mxu0 %v35_v9  ;;  %1449 = vmatmul.mubr.bf16.vlgmr.msra.gmra.mrb[0].mxu1 %v35_v9  ;;  %v2470_v9 = vld [vmem:[%s3368_s1 + $0x404] ss:$16 sps:$4 sm:$0xff]  }
  0x43   :  { %1288 = vmatpush1.bf16.msra.mxu0 %v2372_v7  ;;  %1460 = vmatpush1.bf16.msra.mxu1 %v2375_v8  ;;  %v2462_v7 = vld [vmem:[%s3368_s1 + $0x3e0] ss:$16 sps:$4 sm:$0xff]   ;;  %v2465_v8 = vld [vmem:[%s3368_s1 + $0x3e8] ss:$16 sps:$4 sm:$0xff]  }
  0x44   :  { %1289 = vmatprep.subr.bf16.mxu0 %v2380_v10  ;;  %1461 = vmatprep.subr.bf16.mxu1 %v2383_v11  ;;  %v23_v10 = vld [vmem:[%s3369_s0 + $0x10] sm:$0xff]  ;;  %v30_v11 = vld [vmem:[%s3369_s0 + $0x48] sm:$0xff] }
  0x45   :  { %1319 = vmatprep.mubr.bf16.mxu0 %v38_v36  ;;  %1491 = vmatprep.mubr.bf16.mxu1 %v38_v36  ;;  %v2503_v36 = vld [vmem:[%s3368_s1 + $0x4ac] ss:$16 sps:$4 sm:$0xff]  }
  0x47   :  { %1290 = vmatpush1.bf16.msra.mxu0 %v2378_v12  ;;  %1462 = vmatpush1.bf16.msra.mxu1 %v2381_v13  ;;  %v2473_v12 = vld [vmem:[%s3368_s1 + $0x40c] ss:$16 sps:$4 sm:$0xff]   ;;  %v2468_v13 = vld [vmem:[%s3368_s1 + $0x400] ss:$16 sps:$4 sm:$0xff]  }
  0x48   :  { %1291 = vmatprep.subr.bf16.mxu0 %v2386_v14  ;;  %1463 = vmatprep.subr.bf16.mxu1 %v2389_v15  ;;  %v2471_v14 = vld [vmem:[%s3368_s1 + $0x408] ss:$16 sps:$4 sm:$0xff]   ;;  %v37_v15 = vpack.c.bf16 %v30_v11, %v23_v10  ;;  %v2560_v11 = vld [vmem:[%s3368_s1 + $0x5e4] ss:$16 sps:$4 sm:$0xff]  }
  0x49   :  { %v2555_v10 = vld [vmem:[%s3368_s1 + $0x5c8] ss:$16 sps:$4 sm:$0xff]  }
  0x4b   :  { %1292 = vmatpush1.bf16.msra.mxu0 %v2384_v16  ;;  %1464 = vmatpush1.bf16.msra.mxu1 %v2387_v17  ;;  %v2476_v16 = vld [vmem:[%s3368_s1 + $0x424] ss:$16 sps:$4 sm:$0xff]   ;;  %v2479_v17 = vld [vmem:[%s3368_s1 + $0x42c] ss:$16 sps:$4 sm:$0xff]  }
  0x4c   :  { %1293 = vmatprep.subr.bf16.mxu0 %v2392_v18  ;;  %1465 = vmatprep.subr.bf16.mxu1 %v2395_v19  ;;  %v26_v18 = vld [vmem:[%s3369_s0 + $0x28] sm:$0xff]  ;;  %v2474_v19 = vld [vmem:[%s3368_s1 + $0x420] ss:$16 sps:$4 sm:$0xff]  }
  0x4f   :  { %1294 = vmatpush1.bf16.msra.mxu0 %v2390_v20  ;;  %1466 = vmatpush1.bf16.msra.mxu1 %v2393_v21  ;;  %v2477_v20 = vld [vmem:[%s3368_s1 + $0x428] ss:$16 sps:$4 sm:$0xff]   ;;  %v33_v21 = vld [vmem:[%s3369_s0 + $0x60] sm:$0xff] }
  0x50   :  { %1295 = vmatprep.subr.bf16.mxu0 %v2398_v22  ;;  %1467 = vmatprep.subr.bf16.mxu1 %v2401_v23  ;;  %v2482_v22 = vld [vmem:[%s3368_s1 + $0x444] ss:$16 sps:$4 sm:$0xff]   ;;  %v40_v23 = vpack.c.bf16 %v33_v21, %v26_v18  ;;  %v2569_v18 = vld [vmem:[%s3368_s1 + $0x60c] ss:$16 sps:$4 sm:$0xff]   ;;  %v2567_v21 = vld [vmem:[%s3368_s1 + $0x608] ss:$16 sps:$4 sm:$0xff]  }
  0x53   :  { %1296 = vmatpush1.bf16.msra.mxu0 %v2396_v24  ;;  %1468 = vmatpush1.bf16.msra.mxu1 %v2399_v25  ;;  %v2485_v24 = vld [vmem:[%s3368_s1 + $0x44c] ss:$16 sps:$4 sm:$0xff]   ;;  %v2480_v25 = vld [vmem:[%s3368_s1 + $0x440] ss:$16 sps:$4 sm:$0xff]  }
  0x54   :  { %1297 = vmatprep.subr.bf16.mxu0 %v2404_v26  ;;  %1469 = vmatprep.subr.bf16.mxu1 %v2407_v27  ;;  %v2483_v26 = vld [vmem:[%s3368_s1 + $0x448] ss:$16 sps:$4 sm:$0xff]   ;;  %v2488_v27 = vld [vmem:[%s3368_s1 + $0x464] ss:$16 sps:$4 sm:$0xff]  }
  0x57   :  { %1298 = vmatpush1.bf16.msra.mxu0 %v2402_v28  ;;  %1470 = vmatpush1.bf16.msra.mxu1 %v2405_v29  ;;  %v2491_v28 = vld [vmem:[%s3368_s1 + $0x46c] ss:$16 sps:$4 sm:$0xff]   ;;  %v2486_v29 = vld [vmem:[%s3368_s1 + $0x460] ss:$16 sps:$4 sm:$0xff]  }
  0x58   :  { %1299 = vmatprep.subr.bf16.mxu0 %v2410_v30  ;;  %1471 = vmatprep.subr.bf16.mxu1 %v2413_v31  ;;  %v2489_v30 = vld [vmem:[%s3368_s1 + $0x468] ss:$16 sps:$4 sm:$0xff]   ;;  %v2494_v31 = vld [vmem:[%s3368_s1 + $0x484] ss:$16 sps:$4 sm:$0xff]  }
  0x5b   :  { %1300 = vmatpush1.bf16.msra.mxu0 %v2408_v34  ;;  %1472 = vmatpush1.bf16.msra.mxu1 %v2411_v35  ;;  %v2495_v34 = vld [vmem:[%s3368_s1 + $0x488] ss:$16 sps:$4 sm:$0xff]   ;;  %v2500_v35 = vld [vmem:[%s3368_s1 + $0x4a4] ss:$16 sps:$4 sm:$0xff]  }
  0x5c   :  { %1301 = vmatprep.subr.bf16.mxu0 %v2416_v37  ;;  %1473 = vmatprep.subr.bf16.mxu1 %v2419_v38  ;;  %v2498_v37 = vld [vmem:[%s3368_s1 + $0x4a0] ss:$16 sps:$4 sm:$0xff]   ;;  %v2501_v38 = vld [vmem:[%s3368_s1 + $0x4a8] ss:$16 sps:$4 sm:$0xff]  }
  0x5f   :  { %1302 = vmatpush1.bf16.msra.mxu0 %v2414_v39  ;;  %1474 = vmatpush1.bf16.msra.mxu1 %v2417_v40  ;;  %v2506_v39 = vld [vmem:[%s3368_s1 + $0x4c4] ss:$16 sps:$4 sm:$0xff]   ;;  %v2509_v40 = vld [vmem:[%s3368_s1 + $0x4cc] ss:$16 sps:$4 sm:$0xff]  }
  0x60   :  { %1303 = vmatprep.subr.bf16.mxu0 %v2422_v41  ;;  %1475 = vmatprep.subr.bf16.mxu1 %v2425_v42  ;;  %v2504_v41 = vld [vmem:[%s3368_s1 + $0x4c0] ss:$16 sps:$4 sm:$0xff]   ;;  %v2507_v42 = vld [vmem:[%s3368_s1 + $0x4c8] ss:$16 sps:$4 sm:$0xff]  }
  0x63   :  { %1304 = vmatpush1.bf16.msra.mxu0 %v2420_v43  ;;  %1476 = vmatpush1.bf16.msra.mxu1 %v2423_v44  ;;  %v2512_v43 = vld [vmem:[%s3368_s1 + $0x4e4] ss:$16 sps:$4 sm:$0xff]   ;;  %v2515_v44 = vld [vmem:[%s3368_s1 + $0x4ec] ss:$16 sps:$4 sm:$0xff]  }
  0x64   :  { %1305 = vmatprep.subr.bf16.mxu0 %v2428_v45  ;;  %1477 = vmatprep.subr.bf16.mxu1 %v2431_v46  ;;  %v2510_v45 = vld [vmem:[%s3368_s1 + $0x4e0] ss:$16 sps:$4 sm:$0xff]   ;;  %v2513_v46 = vld [vmem:[%s3368_s1 + $0x4e8] ss:$16 sps:$4 sm:$0xff]  }
  0x67   :  { %1306 = vmatpush1.bf16.msra.mxu0 %v2426_v47  ;;  %1478 = vmatpush1.bf16.msra.mxu1 %v2429_v48  ;;  %v2518_v47 = vld [vmem:[%s3368_s1 + $0x504] ss:$16 sps:$4 sm:$0xff]   ;;  %v2521_v48 = vld [vmem:[%s3368_s1 + $0x50c] ss:$16 sps:$4 sm:$0xff]  }
  0x68   :  { %1307 = vmatprep.subr.bf16.mxu0 %v2434_v49  ;;  %1479 = vmatprep.subr.bf16.mxu1 %v2437_v50  ;;  %v2516_v49 = vld [vmem:[%s3368_s1 + $0x500] ss:$16 sps:$4 sm:$0xff]   ;;  %v2519_v50 = vld [vmem:[%s3368_s1 + $0x508] ss:$16 sps:$4 sm:$0xff]  }
  0x6b   :  { %1308 = vmatpush1.bf16.msra.mxu0 %v2432_v51  ;;  %1480 = vmatpush1.bf16.msra.mxu1 %v2435_v52  ;;  %v2524_v51 = vld [vmem:[%s3368_s1 + $0x524] ss:$16 sps:$4 sm:$0xff]   ;;  %v2527_v52 = vld [vmem:[%s3368_s1 + $0x52c] ss:$16 sps:$4 sm:$0xff]  }
  0x6c   :  { %1309 = vmatprep.subr.bf16.mxu0 %v2440_v53  ;;  %1481 = vmatprep.subr.bf16.mxu1 %v2443_v54  ;;  %v2522_v53 = vld [vmem:[%s3368_s1 + $0x520] ss:$16 sps:$4 sm:$0xff]   ;;  %v2525_v54 = vld [vmem:[%s3368_s1 + $0x528] ss:$16 sps:$4 sm:$0xff]  }
  0x6f   :  { %1310 = vmatpush1.bf16.msra.mxu0 %v2438_v55  ;;  %1482 = vmatpush1.bf16.msra.mxu1 %v2441_v56  ;;  %v2530_v55 = vld [vmem:[%s3368_s1 + $0x544] ss:$16 sps:$4 sm:$0xff]   ;;  %v2533_v56 = vld [vmem:[%s3368_s1 + $0x54c] ss:$16 sps:$4 sm:$0xff]  }
  0x70   :  { %1311 = vmatprep.subr.bf16.mxu0 %v2446_v57  ;;  %1483 = vmatprep.subr.bf16.mxu1 %v2449_v58  ;;  %v2528_v57 = vld [vmem:[%s3368_s1 + $0x540] ss:$16 sps:$4 sm:$0xff]   ;;  %v2531_v58 = vld [vmem:[%s3368_s1 + $0x548] ss:$16 sps:$4 sm:$0xff]  }
  0x73   :  { %1312 = vmatpush1.bf16.msra.mxu0 %v2444_v59  ;;  %1484 = vmatpush1.bf16.msra.mxu1 %v2447_v60  ;;  %v2536_v59 = vld [vmem:[%s3368_s1 + $0x564] ss:$16 sps:$4 sm:$0xff]   ;;  %v2539_v60 = vld [vmem:[%s3368_s1 + $0x56c] ss:$16 sps:$4 sm:$0xff]  }
  0x74   :  { %1313 = vmatprep.subr.bf16.mxu0 %v2452_v61  ;;  %1485 = vmatprep.subr.bf16.mxu1 %v2455_v62  ;;  %v2534_v61 = vld [vmem:[%s3368_s1 + $0x560] ss:$16 sps:$4 sm:$0xff]   ;;  %v2537_v62 = vld [vmem:[%s3368_s1 + $0x568] ss:$16 sps:$4 sm:$0xff]  }
  0x77   :  { %1314 = vmatpush1.bf16.msra.mxu0 %v2450_v63  ;;  %1486 = vmatpush1.bf16.msra.mxu1 %v2453_v0  ;;  %v2542_v63 = vld [vmem:[%s3368_s1 + $0x584] ss:$16 sps:$4 sm:$0xff]   ;;  %v2545_v0 = vld [vmem:[%s3368_s1 + $0x58c] ss:$16 sps:$4 sm:$0xff]  }
  0x78   :  { %1315 = vmatprep.subr.bf16.mxu0 %v2458_v1  ;;  %1487 = vmatprep.subr.bf16.mxu1 %v2461_v2  ;;  %v2540_v1 = vld [vmem:[%s3368_s1 + $0x580] ss:$16 sps:$4 sm:$0xff]   ;;  %v2543_v2 = vld [vmem:[%s3368_s1 + $0x588] ss:$16 sps:$4 sm:$0xff]  }
  0x7b   :  { %1316 = vmatpush1.bf16.msra.mxu0 %v2456_v3  ;;  %1488 = vmatpush1.bf16.msra.mxu1 %v2459_v4  ;;  %v2548_v3 = vld [vmem:[%s3368_s1 + $0x5a4] ss:$16 sps:$4 sm:$0xff]   ;;  %v2551_v4 = vld [vmem:[%s3368_s1 + $0x5ac] ss:$16 sps:$4 sm:$0xff]  }
  0x7c   :  { %1317 = vmatprep.subr.bf16.mxu0 %v2464_v5  ;;  %1489 = vmatprep.subr.bf16.mxu1 %v2467_v6  ;;  %v2546_v5 = vld [vmem:[%s3368_s1 + $0x5a0] ss:$16 sps:$4 sm:$0xff]   ;;  %v2549_v6 = vld [vmem:[%s3368_s1 + $0x5a8] ss:$16 sps:$4 sm:$0xff]  }
  0x7f   :  { %1318 = vmatpush1.bf16.msra.mxu0 %v2462_v7  ;;  %1490 = vmatpush1.bf16.msra.mxu1 %v2465_v8  ;;  %v2554_v7 = vld [vmem:[%s3368_s1 + $0x5c4] ss:$16 sps:$4 sm:$0xff]   ;;  %v2557_v8 = vld [vmem:[%s3368_s1 + $0x5cc] ss:$16 sps:$4 sm:$0xff]  }
  0x80   :  { %1330 = vmatprep.subr.bf16.mxu0 %v2470_v9  ;;  %1502 = vmatprep.subr.bf16.mxu1 %v2473_v12  ;;  %v2552_v9 = vld [vmem:[%s3368_s1 + $0x5c0] ss:$16 sps:$4 sm:$0xff]   ;;  %v2563_v12 = vld [vmem:[%s3368_s1 + $0x5ec] ss:$16 sps:$4 sm:$0xff]  }
  0x82   :  { %1320 = vmatmul.mubr.bf16.vlgmr.msra.gmra.mrb[0].mxu0 %v37_v15  ;;  %1492 = vmatmul.mubr.bf16.vlgmr.msra.gmra.mrb[0].mxu1 %v37_v15  ;;  %v25_v15 = vld [vmem:[%s3369_s0 + $0x20] sm:$0xff] }
  0x83   :  { %1331 = vmatpush1.bf16.msra.mxu0 %v2468_v13  ;;  %1503 = vmatpush1.bf16.msra.mxu1 %v2471_v14  ;;  %v2558_v13 = vld [vmem:[%s3368_s1 + $0x5e0] ss:$16 sps:$4 sm:$0xff]   ;;  %v2561_v14 = vld [vmem:[%s3368_s1 + $0x5e8] ss:$16 sps:$4 sm:$0xff]  }
  0x84   :  { %1332 = vmatprep.subr.bf16.mxu0 %v2476_v16  ;;  %1504 = vmatprep.subr.bf16.mxu1 %v2479_v17  ;;  %v32_v16 = vld [vmem:[%s3369_s0 + $0x58] sm:$0xff]  ;;  %v2566_v17 = vld [vmem:[%s3368_s1 + $0x604] ss:$16 sps:$4 sm:$0xff]  }
  0x85   :  { %1362 = vmatprep.mubr.bf16.mxu0 %v40_v23  ;;  %1534 = vmatprep.mubr.bf16.mxu1 %v40_v23  ;;  %v2571_v23 = vld [vmem:[%s3370_s3 + $0xc0] sm:$0xff]  }
  0x87   :  { %1333 = vmatpush1.bf16.msra.mxu0 %v2474_v19  ;;  %1505 = vmatpush1.bf16.msra.mxu1 %v2477_v20  ;;  %v39_v19 = vpack.c.bf16 %v32_v16, %v25_v15  ;;  %v2564_v20 = vld [vmem:[%s3368_s1 + $0x600] ss:$16 sps:$4 sm:$0xff]  }
  0x88   :  { %1334 = vmatprep.subr.bf16.mxu0 %v2482_v22  ;;  %1506 = vmatprep.subr.bf16.mxu1 %v2485_v24  ;;  %v2570_v22 = vld [vmem:[%s3370_s3 + $0x40] sm:$0xff]   ;;  %v2602_v24 = vmov 0  }
  0x8b   :  { %1335 = vmatpush1.bf16.msra.mxu0 %v2480_v25  ;;  %1507 = vmatpush1.bf16.msra.mxu1 %v2483_v26  ;;  %v27_v25 = vld [vmem:[%s3369_s0 + $0x30] sm:$0xff]  ;;  %v34_v26 = vld [vmem:[%s3369_s0 + $0x68] sm:$0xff] }
  0x8c   :  { %1336 = vmatprep.subr.bf16.mxu0 %v2488_v27  ;;  %1508 = vmatprep.subr.bf16.mxu1 %v2491_v28  ;;  %v41_v27 = vpack.c.bf16 %v34_v26, %v27_v25  ;;  %v2572_v28 = vld [vmem:[%s3370_s3] sm:$0xff]  }
  0x8f   :  { %1337 = vmatpush1.bf16.msra.mxu0 %v2486_v29  ;;  %1509 = vmatpush1.bf16.msra.mxu1 %v2489_v30  ;;  %v2573_v29 = vld [vmem:[%s3370_s3 + $0x80] sm:$0xff]   ;;  %v2574_v30 = vld [vmem:[%s3370_s3 + $0x48] sm:$0xff]  }
  0x90   :  { %1338 = vmatprep.subr.bf16.mxu0 %v2494_v31  ;;  %1510 = vmatprep.subr.bf16.mxu1 %v2497_v32  ;;  %v2575_v31 = vld [vmem:[%s3370_s3 + $0xc8] sm:$0xff]  }
  0x91   :  { %v2576_v32 = vld [vmem:[%s3370_s3 + $0x8] sm:$0xff]  }
  0x93   :  { %1339 = vmatpush1.bf16.msra.mxu0 %v2492_v33  ;;  %1511 = vmatpush1.bf16.msra.mxu1 %v2495_v34  ;;  %v2577_v33 = vld [vmem:[%s3370_s3 + $0x88] sm:$0xff]   ;;  %v2578_v34 = vld [vmem:[%s3370_s3 + $0x50] sm:$0xff]  }
  0x94   :  { %1340 = vmatprep.subr.bf16.mxu0 %v2500_v35  ;;  %1512 = vmatprep.subr.bf16.mxu1 %v2503_v36  ;;  %v2579_v35 = vld [vmem:[%s3370_s3 + $0xd0] sm:$0xff]  }
  0x95   :  { %v2580_v36 = vld [vmem:[%s3370_s3 + $0x10] sm:$0xff]  }
  0x97   :  { %1341 = vmatpush1.bf16.msra.mxu0 %v2498_v37  ;;  %1513 = vmatpush1.bf16.msra.mxu1 %v2501_v38  ;;  %v2581_v37 = vld [vmem:[%s3370_s3 + $0x90] sm:$0xff]   ;;  %v2582_v38 = vld [vmem:[%s3370_s3 + $0x58] sm:$0xff]  }
  0x98   :  { %1342 = vmatprep.subr.bf16.mxu0 %v2506_v39  ;;  %1514 = vmatprep.subr.bf16.mxu1 %v2509_v40  ;;  %v2583_v39 = vld [vmem:[%s3370_s3 + $0xd8] sm:$0xff]  }
  0x99   :  { %v2584_v40 = vld [vmem:[%s3370_s3 + $0x18] sm:$0xff]  }
  0x9b   :  { %1343 = vmatpush1.bf16.msra.mxu0 %v2504_v41  ;;  %1515 = vmatpush1.bf16.msra.mxu1 %v2507_v42  ;;  %v2585_v41 = vld [vmem:[%s3370_s3 + $0x98] sm:$0xff]   ;;  %v2586_v42 = vld [vmem:[%s3370_s3 + $0x60] sm:$0xff]  }
  0x9c   :  { %1344 = vmatprep.subr.bf16.mxu0 %v2512_v43  ;;  %1516 = vmatprep.subr.bf16.mxu1 %v2515_v44  ;;  %v2587_v43 = vld [vmem:[%s3370_s3 + $0xe0] sm:$0xff]  }
  0x9d   :  { %v2588_v44 = vld [vmem:[%s3370_s3 + $0x20] sm:$0xff]  }
  0x9f   :  { %1345 = vmatpush1.bf16.msra.mxu0 %v2510_v45  ;;  %1517 = vmatpush1.bf16.msra.mxu1 %v2513_v46  ;;  %v2589_v45 = vld [vmem:[%s3370_s3 + $0xa0] sm:$0xff]   ;;  %v2590_v46 = vld [vmem:[%s3370_s3 + $0x68] sm:$0xff]  }
  0xa0   :  { %1346 = vmatprep.subr.bf16.mxu0 %v2518_v47  ;;  %1518 = vmatprep.subr.bf16.mxu1 %v2521_v48  ;;  %v2591_v47 = vld [vmem:[%s3370_s3 + $0xe8] sm:$0xff]  }
  0xa1   :  { %v2592_v48 = vld [vmem:[%s3370_s3 + $0x28] sm:$0xff]  }
  0xa3   :  { %1347 = vmatpush1.bf16.msra.mxu0 %v2516_v49  ;;  %1519 = vmatpush1.bf16.msra.mxu1 %v2519_v50  ;;  %v2593_v49 = vld [vmem:[%s3370_s3 + $0xa8] sm:$0xff]   ;;  %v2594_v50 = vld [vmem:[%s3370_s3 + $0x70] sm:$0xff]  }
  0xa4   :  { %1348 = vmatprep.subr.bf16.mxu0 %v2524_v51  ;;  %1520 = vmatprep.subr.bf16.mxu1 %v2527_v52  ;;  %v2595_v51 = vld [vmem:[%s3370_s3 + $0xf0] sm:$0xff]  }
  0xa5   :  { %v2596_v52 = vld [vmem:[%s3370_s3 + $0x30] sm:$0xff]  }
  0xa7   :  { %1349 = vmatpush1.bf16.msra.mxu0 %v2522_v53  ;;  %1521 = vmatpush1.bf16.msra.mxu1 %v2525_v54  ;;  %v2597_v53 = vld [vmem:[%s3370_s3 + $0xb0] sm:$0xff]   ;;  %v2598_v54 = vld [vmem:[%s3370_s3 + $0x78] sm:$0xff]  }
  0xa8   :  { %1350 = vmatprep.subr.bf16.mxu0 %v2530_v55  ;;  %1522 = vmatprep.subr.bf16.mxu1 %v2533_v56  ;;  %v2599_v55 = vld [vmem:[%s3370_s3 + $0xf8] sm:$0xff]  }
  0xa9   :  { %v2600_v56 = vld [vmem:[%s3370_s3 + $0x38] sm:$0xff]  }
  0xab   :  { %1351 = vmatpush1.bf16.msra.mxu0 %v2528_v57  ;;  %1523 = vmatpush1.bf16.msra.mxu1 %v2531_v58  ;;  %v2601_v57 = vld [vmem:[%s3370_s3 + $0xb8] sm:$0xff]   ;;  %v240_v58 = vlaneseq }
  0xac   :  { %1352 = vmatprep.subr.bf16.mxu0 %v2536_v59  ;;  %1524 = vmatprep.subr.bf16.mxu1 %v2539_v60 }
  0xad   :  { %v241_v59 = vshrl.u32 %v240_v58, 7 }
  0xaf   :  { %1353 = vmatpush1.bf16.msra.mxu0 %v2534_v61  ;;  %1525 = vmatpush1.bf16.msra.mxu1 %v2537_v62  ;;  %v242_v60 = vsub.s32 0, %v241_v59  ;;  %v250_v61 = vsub.s32 2, %v241_v59  ;;  %v238_v62 = vld [vmem:[%s3371_s2] sm:$0xf] }
  0xb0   :  { %1354 = vmatprep.subr.bf16.mxu0 %v2542_v63  ;;  %1526 = vmatprep.subr.bf16.mxu1 %v2545_v0  ;;  %v246_v63 = vsub.s32 1, %v241_v59  ;;  %v254_v0 = vsub.s32 3, %v241_v59 }
  0xb3   :  { %1355 = vmatpush1.bf16.msra.mxu0 %v2540_v1  ;;  %1527 = vmatpush1.bf16.msra.mxu1 %v2543_v2  ;;  %v243_v1 = vrot.slane %v238_v62, %v242_v60  ;;  %v251_v2 = vrot.slane %v238_v62, %v250_v61 }
  0xb4   :  { %1356 = vmatprep.subr.bf16.mxu0 %v2548_v3  ;;  %1528 = vmatprep.subr.bf16.mxu1 %v2551_v4  ;;  %v247_v3 = vrot.slane %v238_v62, %v246_v63  ;;  %v255_v4 = vrot.slane %v238_v62, %v254_v0 }
  0xb7   :  { %1357 = vmatpush1.bf16.msra.mxu0 %v2546_v5  ;;  %1529 = vmatpush1.bf16.msra.mxu1 %v2549_v6 }
  0xb8   :  { %1358 = vmatprep.subr.bf16.mxu0 %v2554_v7  ;;  %1530 = vmatprep.subr.bf16.mxu1 %v2557_v8 }
  0xbb   :  { %1359 = vmatpush1.bf16.msra.mxu0 %v2552_v9  ;;  %1531 = vmatpush1.bf16.msra.mxu1 %v2555_v10 }
  0xbc   :  { %1360 = vmatprep.subr.bf16.mxu0 %v2560_v11  ;;  %1532 = vmatprep.subr.bf16.mxu1 %v2563_v12 }
  0xbf   :  { %1361 = vmatpush1.bf16.msra.mxu0 %v2558_v13  ;;  %1533 = vmatpush1.bf16.msra.mxu1 %v2561_v14 }
  0xc0   :  { %1373 = vmatprep.subr.bf16.mxu0 %v2566_v17  ;;  %1545 = vmatprep.subr.bf16.mxu1 %v2569_v18 }
  0xc2   :  { %1363 = vmatmul.mubr.bf16.vlgmr.msra.gmra.mrb[0].mxu0 %v39_v19  ;;  %1535 = vmatmul.mubr.bf16.vlgmr.msra.gmra.mrb[0].mxu1 %v39_v19 }
  0xc3   :  { %1374 = vmatpush1.bf16.msra.mxu0 %v2564_v20  ;;  %1546 = vmatpush1.bf16.msra.mxu1 %v2567_v21 }
  0xc4   :  { %1405 = vmatprep.mubr.bf16.mxu0 %v2602_v24  ;;  %1577 = vmatprep.mubr.bf16.mxu1 %v2602_v24 }
  0xc5   :  { %2199 = vmatprep.subr.bf16.mxu0 %v2570_v22  ;;  %2221 = vmatprep.subr.bf16.mxu1 %v2571_v23 }
  0xce   :  { %2155 = vmatmul.mubr.msk.bf16.vlgmr.msra.gmra.mrb[0].mxu0 %vm1240_vm0, %v41_v27  ;;  %2156 = vmatmul.mubr.msk.bf16.vlgmr.msra.gmra.mrb[0].mxu1 %vm1240_vm0, %v41_v27 }
  0xcf   :  { %2200 = vmatpush3.bf16.msra.mxu0 %v2572_v28  ;;  %2222 = vmatpush3.bf16.msra.mxu1 %v2573_v29 }
  0xd0   :  { %2201 = vmatprep.subr.bf16.mxu0 %v2574_v30  ;;  %2223 = vmatprep.subr.bf16.mxu1 %v2575_v31 }
  0xd3   :  { %2202 = vmatpush3.bf16.msra.mxu0 %v2576_v32  ;;  %2224 = vmatpush3.bf16.msra.mxu1 %v2577_v33 }
  0xd4   :  { %2203 = vmatprep.subr.bf16.mxu0 %v2578_v34  ;;  %2225 = vmatprep.subr.bf16.mxu1 %v2579_v35  ;;  %v2157_v35 = vld [vmem:[%s3372_s4] ss:$0 sm:$0xff] }
  0xd7   :  { %2204 = vmatpush3.bf16.msra.mxu0 %v2580_v36  ;;  %2226 = vmatpush3.bf16.msra.mxu1 %v2581_v37 }
  0xd8   :  { %2205 = vmatprep.subr.bf16.mxu0 %v2582_v38  ;;  %2227 = vmatprep.subr.bf16.mxu1 %v2583_v39 }
  0xdb   :  { %2206 = vmatpush3.bf16.msra.mxu0 %v2584_v40  ;;  %2228 = vmatpush3.bf16.msra.mxu1 %v2585_v41 }
  0xdc   :  { %2207 = vmatprep.subr.bf16.mxu0 %v2586_v42  ;;  %2229 = vmatprep.subr.bf16.mxu1 %v2587_v43 }
  0xdf   :  { %2208 = vmatpush3.bf16.msra.mxu0 %v2588_v44  ;;  %2230 = vmatpush3.bf16.msra.mxu1 %v2589_v45 }
  0xe0   :  { %2209 = vmatprep.subr.bf16.mxu0 %v2590_v46  ;;  %2231 = vmatprep.subr.bf16.mxu1 %v2591_v47 }
  0xe3   :  { %2210 = vmatpush3.bf16.msra.mxu0 %v2592_v48  ;;  %2232 = vmatpush3.bf16.msra.mxu1 %v2593_v49 }
  0xe4   :  { %2211 = vmatprep.subr.bf16.mxu0 %v2594_v50  ;;  %2233 = vmatprep.subr.bf16.mxu1 %v2595_v51 }
  0xe7   :  { %2212 = vmatpush3.bf16.msra.mxu0 %v2596_v52  ;;  %2234 = vmatpush3.bf16.msra.mxu1 %v2597_v53 }
  0xe8   :  { %2213 = vmatprep.subr.bf16.mxu0 %v2598_v54  ;;  %2235 = vmatprep.subr.bf16.mxu1 %v2599_v55 }
  0xeb   :  { %2214 = vmatpush3.bf16.msra.mxu0 %v2600_v56  ;;  %2236 = vmatpush3.bf16.msra.mxu1 %v2601_v57 }
 0x1a1   :  { %v1407_v5 = vpop.f32.mrb[0].mxu0  ;;  %v1579_v6 = vpop.f32.mrb[0].mxu1 }
 0x1a2   :  { %v2243_v7 = vadd.f32 %v1407_v5, %v243_v1  ;;  %v2247_v8 = vadd.f32 %v1579_v6, %v251_v2  ;;  %v1409_v9 = vpop.f32.mrb[1].mxu0  ;;  %v1581_v10 = vpop.f32.mrb[1].mxu1 }
 0x1a3   :  { %v2244_v11 = vadd.f32 %v1409_v9, %v247_v3  ;;  %v2248_v12 = vadd.f32 %v1581_v10, %v255_v4  ;;  %v1411_v13 = vpop.f32.mrb[2].mxu0  ;;  %v1583_v14 = vpop.f32.mrb[2].mxu1 }
 0x1a4   :  { %v2245_v15 = vadd.f32 %v1411_v13, %v243_v1  ;;  %v2249_v16 = vadd.f32 %v1583_v14, %v251_v2  ;;  %v1413_v17 = vpop.f32.mrb[3].mxu0  ;;  %v1585_v18 = vpop.f32.mrb[3].mxu1  ;;  %v1588_v21 = vmax.f32 %v2243_v7, 0.0  ;;  %v1590_v22 = vmax.f32 %v2247_v8, 0.0 }
 0x1a5   :  { %v2246_v19 = vadd.f32 %v1413_v17, %v247_v3  ;;  %v2250_v20 = vadd.f32 %v1585_v18, %v255_v4  ;;  %v1589_v25 = vmax.f32 %v2244_v11, 0.0  ;;  %v1591_v26 = vmax.f32 %v2248_v12, 0.0 }
 0x1a6   :  { %v1592_v23 = vmax.f32 %v2245_v15, 0.0  ;;  %v1594_v24 = vmax.f32 %v2249_v16, 0.0 }
 0x1a7   :  { %v1593_v27 = vmax.f32 %v2246_v19, 0.0  ;;  %v1595_v28 = vmax.f32 %v2250_v20, 0.0 }
 0x1a8   :  { %v1596_v29 = vpack.c.bf16 %v1592_v23, %v1588_v21  ;;  %v1598_v30 = vpack.c.bf16 %v1594_v24, %v1590_v22 }
 0x1a9   :  { %v1597_v31 = vpack.c.bf16 %v1593_v27, %v1589_v25  ;;  %v1599_v32 = vpack.c.bf16 %v1595_v28, %v1591_v26 }
 0x1ab   :  { %1895 = vmatprep.mubr.bf16.mxu0 %v1597_v31  ;;  %1936 = vmatprep.mubr.bf16.mxu1 %v1599_v32 }
 0x1ac   :  { %1896 = vmatmul.mubr.bf16.vlgmr.msra.gmra.mrb[4].mxu0 %v1596_v29  ;;  %1937 = vmatmul.mubr.bf16.vlgmr.msra.gmra.mrb[4].mxu1 %v1598_v30 }
 0x27f   :  { %v2215_v33 = vpop.f32.mrb[4].mxu0  ;;  %v2237_v34 = vpop.f32.mrb[4].mxu1 }
 0x280   :  { %v2216_v36 = vpop.f32.mrb[5].mxu0  ;;  %v2238_v37 = vpop.f32.mrb[5].mxu1 }
 0x281   :  { %v2217_v38 = vadd.f32 %v2216_v36, %v2215_v33  ;;  %v2239_v39 = vadd.f32 %v2238_v37, %v2237_v34  ;;  %v2218_v40 = vpop.f32.mrb[6].mxu0  ;;  %v2240_v41 = vpop.f32.mrb[6].mxu1 }
 0x282   :  { %v2219_v42 = vpop.f32.mrb[7].mxu0  ;;  %v2241_v43 = vpop.f32.mrb[7].mxu1 }
 0x283   :  { %v1898_v44 = vadd.f32 %v2217_v38, %v2157_v35  ;;  %v2220_v45 = vadd.f32 %v2219_v42, %v2218_v40  ;;  %v2242_v46 = vadd.f32 %v2241_v43, %v2240_v41 }
 0x285   :  { %v1939_v47 = vadd.f32 %v2239_v39, %v1898_v44  ;;  %v1901_v48 = vadd.f32 %v2220_v45, %v2157_v35 }
 0x287   :  { %v1942_v49 = vadd.f32 %v2242_v46, %v1901_v48 }
 0x289   :  { %v2197_v50 = vpack.c.bf16 %v1942_v49, %v1939_v47 }
 0x28b   :  { %2198 = vst [vmem:[%s3373_s5] sm:$0xff] %v2197_v50  }

</bundles_post_ra>
